<compile_context>
chip_gen: v7x
topology: tpu7x:2x2x1
jax: 0.10.0
libtpu: 0.0.40
codegen_flags: <defaults>
</compile_context>

<pallas_src>
import jax
import jax.numpy as jnp
from jax.experimental import pallas as pl
from jax.experimental.pallas import tpu as pltpu


def _round_up(n, m):
    return ((n + m - 1) // m) * m


# ---------------------------------------------------------------------------
# Kernel (feature-major layout):
#   xt_ref  : (K_pad, TB)   bf16   batch in lanes, tiled over the grid
#   w1t_ref : (H, K_pad)    bf16   VMEM-resident (same block every step)
#   b1_ref  : (H, 1)        f32
#   w2t_ref : (O_pad, H)    f32    VMEM-resident (tiny)
#   b2_ref  : (O_pad, 1)    f32
#   o_ref   : (O_pad, TB)   f32    lane-dense, narrow writeback
# ---------------------------------------------------------------------------
def _mlp_kernel(xt_ref, w1t_ref, b1_ref, w2t_ref, b2_ref, o_ref):
    # h_T = relu(W1^T @ x_T + b1); bf16 MXU operands, f32 accumulation.
    h = jnp.dot(w1t_ref[...], xt_ref[...], preferred_element_type=jnp.float32)
    h = jnp.maximum(h + b1_ref[...], 0.0)           # (H, TB) + (H, 1), f32 VPU
    # y_T = W2^T @ h_T + b2; second matmul kept in f32 (tiny M=O_pad, no requant).
    y = jnp.dot(w2t_ref[...], h, preferred_element_type=jnp.float32)
    o_ref[...] = (y + b2_ref[...]).astype(o_ref.dtype)


def prepare_params(w1, b1, w2, b2):
    """One-time parameter prep (hoisted out of the per-call path):
    transpose to feature-major, zero-pad, cast the streaming-matmul weight
    to bf16.  w1: (K, H); b1: (1, H) or (H,); w2: (H, O); b2: (1, O) or (O,)."""
    K, H = w1.shape
    out_size = w2.shape[1]
    K_pad = _round_up(K, 16)           # bf16 sublane packing -> multiple of 16
    O_pad = _round_up(out_size, 8)     # f32 sublane tile for the output block

    w1t = jnp.zeros((H, K_pad), jnp.bfloat16).at[:, :K].set(
        w1.T.astype(jnp.bfloat16))
    b1c = jnp.asarray(b1, jnp.float32).reshape(H, 1)
    w2t = jnp.zeros((O_pad, H), jnp.float32).at[:out_size, :].set(
        w2.T.astype(jnp.float32))
    b2c = jnp.zeros((O_pad, 1), jnp.float32).at[:out_size, :].set(
        jnp.asarray(b2, jnp.float32).reshape(out_size, 1))
    return {
        "w1t": w1t, "b1": b1c, "w2t": w2t, "b2": b2c,
        "k": K, "k_pad": K_pad, "hidden": H,
        "out": out_size, "out_pad": O_pad,
    }


def _forward_jnp(x, params):
    """Plain-XLA path with the same numerics as the kernel (small batches)."""
    K, K_pad = params["k"], params["k_pad"]
    B = x.shape[0]
    xt = jnp.zeros((K_pad, B), jnp.bfloat16).at[:K, :].set(
        x.T.astype(jnp.bfloat16))
    h = jnp.maximum(
        jnp.dot(params["w1t"], xt, preferred_element_type=jnp.float32)
        + params["b1"], 0.0)
    y = jnp.dot(params["w2t"], h, preferred_element_type=jnp.float32) + params["b2"]
    return y[:params["out"], :].T


def _forward_pallas(x, params, *, block_b=4096):
    B = x.shape[0]
    K, K_pad = params["k"], params["k_pad"]
    H = params["hidden"]
    out_size, O_pad = params["out"], params["out_pad"]

    # Batch tile: multiple of 128 (batch lives in lanes), capped by block_b,
    # and split into >= 2 tiles whenever possible so both v7x TCs get work.
    lanes = _round_up(B, 128) // 128
    if lanes <= 1:
        TB = 128
    else:
        TB = min(_round_up(block_b, 128), ((lanes + 1) // 2) * 128)
    B_pad = _round_up(B, TB)
    num_tiles = B_pad // TB

    # Only the streaming activation is padded/cast per call (zero K/batch pad
    # contributes nothing to the dot; padded batch columns are sliced off).
    xt = jnp.zeros((K_pad, B_pad), jnp.bfloat16).at[:K, :B].set(
        x.T.astype(jnp.bfloat16))

    yt = pl.pallas_call(
        _mlp_kernel,
        out_shape=jax.ShapeDtypeStruct((O_pad, B_pad), jnp.float32),
        grid=(num_tiles,),
        in_specs=[
            pl.BlockSpec((K_pad, TB), lambda i: (0, i)),   # x^T: tiled over batch
            pl.BlockSpec((H, K_pad), lambda i: (0, 0)),    # W1^T: VMEM-resident
            pl.BlockSpec((H, 1), lambda i: (0, 0)),        # b1
            pl.BlockSpec((O_pad, H), lambda i: (0, 0)),    # W2^T: VMEM-resident
            pl.BlockSpec((O_pad, 1), lambda i: (0, 0)),    # b2
        ],
        out_specs=pl.BlockSpec((O_pad, TB), lambda i: (0, i)),
        compiler_params=pltpu.CompilerParams(
            dimension_semantics=("parallel",),      # shard batch tiles on v7x's 2 TCs
            vmem_limit_bytes=32 * 1024 * 1024,      # ~5 MiB actually needed at TB=4096
        ),
    )(xt, params["w1t"], params["b1"], params["w2t"], params["b2"])

    return yt[:out_size, :B].T


def linear_q_network_forward(x, params, *, block_b=4096, min_pallas_batch=256):
    """x: (B, input_size) f32; params: output of prepare_params().
    Returns (B, output_size) f32 = linear_two(relu(linear_one(x)))."""
    B = x.shape[0]
    if B < min_pallas_batch:
        # Launch/DMA overhead dominates tiny batches; plain XLA is faster.
        return _forward_jnp(x, params)
    return _forward_pallas(x, params, block_b=block_b)


def init_params(key, input_size, hidden_size, output_size):
    """Deterministic init mirroring torch.nn.Linear (uniform +-1/sqrt(fan_in))."""
    k1, k2, k3, k4 = jax.random.split(key, 4)
    bound1 = 1.0 / jnp.sqrt(jnp.float32(input_size))
    bound2 = 1.0 / jnp.sqrt(jnp.float32(hidden_size))
    w1 = jax.random.uniform(k1, (input_size, hidden_size), jnp.float32,
                            -bound1, bound1)
    b1 = jax.random.uniform(k2, (1, hidden_size), jnp.float32, -bound1, bound1)
    w2 = jax.random.uniform(k3, (hidden_size, output_size), jnp.float32,
                            -bound2, bound2)
    b2 = jax.random.uniform(k4, (1, output_size), jnp.float32, -bound2, bound2)
    return w1, b1, w2, b2


if __name__ == "__main__":
    # Shapes implied by the module's default/load path: input=11, hidden=256, output=3.
    # TODO(synk): save/load (torch.save/state_dict) is host-side I/O, not kernel work.
    input_size, hidden_size, output_size = 11, 256, 3

    key = jax.random.PRNGKey(0)
    kx, kp, kx2 = jax.random.split(key, 3)
    w1, b1, w2, b2 = init_params(kp, input_size, hidden_size, output_size)
    params = prepare_params(w1, b1, w2, b2)   # one-time prep, reused every call

    # Batch large enough to take the Pallas path (2 tiles of 256, with padding).
    batch = 384
    x = jax.random.normal(kx, (batch, input_size), jnp.float32)
    out = linear_q_network_forward(x, params)
    jax.block_until_ready(out)
    assert out.shape == (batch, output_size)

    # Matching-numerics reference: bf16 operands on the first matmul (f32 acc),
    # f32 second matmul + biases.
    h_ref = jnp.maximum(
        jnp.dot(x.astype(jnp.bfloat16), w1.astype(jnp.bfloat16),
                preferred_element_type=jnp.float32) + b1, 0.0)
    ref = jnp.dot(h_ref, w2, preferred_element_type=jnp.float32) + b2
    assert jnp.allclose(out, ref, atol=2e-3, rtol=2e-3)

    # Loose sanity check against the full-f32 reference (bf16 rounding slack).
    ref_f32 = jnp.maximum(x @ w1 + b1, 0.0) @ w2 + b2
    assert jnp.allclose(out, ref_f32, atol=5e-2, rtol=5e-2)

    # Small-batch inference path (jnp fallback, same numerics).
    x_small = jax.random.normal(kx2, (8, input_size), jnp.float32)
    out_small = linear_q_network_forward(x_small, params)
    jax.block_until_ready(out_small)
    assert out_small.shape == (8, output_size)
    ref_small = jnp.maximum(x_small @ w1 + b1, 0.0) @ w2 + b2
    assert jnp.allclose(out_small, ref_small, atol=5e-2, rtol=5e-2)

    print("KERNEL_OK")
</pallas_src>

<mosaic_0001>
module attributes {stable_mosaic.version = 11 : i64} {
  func.func @_mlp_kernel(%arg0: i32, %arg1: memref<16x256xbf16, #tpu.memory_space<vmem>>, %arg2: memref<256x16xbf16, #tpu.memory_space<vmem>>, %arg3: memref<256x1xf32, #tpu.memory_space<vmem>>, %arg4: memref<8x256xf32, #tpu.memory_space<vmem>>, %arg5: memref<8x1xf32, #tpu.memory_space<vmem>>, %arg6: memref<8x256xf32, #tpu.memory_space<vmem>>) attributes {dimension_semantics = [#tpu.dimension_semantics<parallel>], iteration_bounds = array<i64: 2>, scalar_prefetch = 0 : i64, scratch_operands = 0 : i64, tpu.core_type = #tpu.core_type<tc>, window_params = [{transform_indices = @transform_0, window_bounds = array<i64: 16, 256>}, {pipeline_mode = #tpu.pipeline_mode<synchronous>, transform_indices = @transform_1, window_bounds = array<i64: 256, 16>}, {pipeline_mode = #tpu.pipeline_mode<synchronous>, transform_indices = @transform_2, window_bounds = array<i64: 256, 1>}, {pipeline_mode = #tpu.pipeline_mode<synchronous>, transform_indices = @transform_3, window_bounds = array<i64: 8, 256>}, {pipeline_mode = #tpu.pipeline_mode<synchronous>, transform_indices = @transform_4, window_bounds = array<i64: 8, 1>}, {transform_indices = @transform_5, window_bounds = array<i64: 8, 256>}]} {
    %c0 = arith.constant 0 : index
    %c0_0 = arith.constant 0 : index
    %0 = vector.load %arg2[%c0, %c0_0] : memref<256x16xbf16, #tpu.memory_space<vmem>>, vector<256x16xbf16>
    %c0_1 = arith.constant 0 : index
    %c0_2 = arith.constant 0 : index
    %1 = vector.load %arg1[%c0_1, %c0_2] : memref<16x256xbf16, #tpu.memory_space<vmem>>, vector<16x256xbf16>
    %cst = arith.constant dense<0.000000e+00> : vector<256x256xf32>
    %2 = tpu.matmul %0, %1, %cst {dimension_numbers = #tpu.dot_dimension_numbers<[1], [0], [0], [1], [0, 0, 1, 1], [], []>} : vector<256x16xbf16>, vector<16x256xbf16>, vector<256x256xf32> -> vector<256x256xf32>
    %c0_3 = arith.constant 0 : index
    %c0_4 = arith.constant 0 : index
    %3 = vector.load %arg3[%c0_3, %c0_4] : memref<256x1xf32, #tpu.memory_space<vmem>>, vector<256x1xf32>
    %4 = vector.broadcast %3 : vector<256x1xf32> to vector<256x256xf32>
    %5 = arith.addf %2, %4 : vector<256x256xf32>
    %cst_5 = arith.constant 0.000000e+00 : f32
    %6 = vector.broadcast %cst_5 : f32 to vector<256x256xf32>
    %7 = arith.maximumf %5, %6 : vector<256x256xf32>
    %c0_6 = arith.constant 0 : index
    %c0_7 = arith.constant 0 : index
    %8 = vector.load %arg4[%c0_6, %c0_7] : memref<8x256xf32, #tpu.memory_space<vmem>>, vector<8x256xf32>
    %cst_8 = arith.constant dense<0.000000e+00> : vector<8x256xf32>
    %9 = tpu.matmul %8, %7, %cst_8 {dimension_numbers = #tpu.dot_dimension_numbers<[1], [0], [0], [1], [0, 0, 1, 1], [], []>} : vector<8x256xf32>, vector<256x256xf32>, vector<8x256xf32> -> vector<8x256xf32>
    %c0_9 = arith.constant 0 : index
    %c0_10 = arith.constant 0 : index
    %10 = vector.load %arg5[%c0_9, %c0_10] : memref<8x1xf32, #tpu.memory_space<vmem>>, vector<8x1xf32>
    %11 = vector.broadcast %10 : vector<8x1xf32> to vector<8x256xf32>
    %12 = arith.addf %9, %11 : vector<8x256xf32>
    %c0_11 = arith.constant 0 : index
    %c0_12 = arith.constant 0 : index
    %13 = vector.load %arg6[%c0_11, %c0_12] : memref<8x256xf32, #tpu.memory_space<vmem>>, vector<8x256xf32>
    tpu.vector_store %arg6[%c0_11, %c0_12], %12 {strides = array<i32>} : memref<8x256xf32, #tpu.memory_space<vmem>>, vector<8x256xf32>,
    return
  }
  func.func @transform_0(%arg0: i32) -> (i32, i32) {
    %c0_i32 = arith.constant 0 : i32
    %c0_i32_0 = arith.constant 0 : i32
    return %c0_i32, %arg0 : i32, i32
  }
  func.func @transform_1(%arg0: i32) -> (i32, i32) {
    %c0_i32 = arith.constant 0 : i32
    %c0_i32_0 = arith.constant 0 : i32
    %c0_i32_1 = arith.constant 0 : i32
    return %c0_i32, %c0_i32_0 : i32, i32
  }
  func.func @transform_2(%arg0: i32) -> (i32, i32) {
    %c0_i32 = arith.constant 0 : i32
    %c0_i32_0 = arith.constant 0 : i32
    %c0_i32_1 = arith.constant 0 : i32
    return %c0_i32, %c0_i32_0 : i32, i32
  }
  func.func @transform_3(%arg0: i32) -> (i32, i32) {
    %c0_i32 = arith.constant 0 : i32
    %c0_i32_0 = arith.constant 0 : i32
    %c0_i32_1 = arith.constant 0 : i32
    return %c0_i32, %c0_i32_0 : i32, i32
  }
  func.func @transform_4(%arg0: i32) -> (i32, i32) {
    %c0_i32 = arith.constant 0 : i32
    %c0_i32_0 = arith.constant 0 : i32
    %c0_i32_1 = arith.constant 0 : i32
    return %c0_i32, %c0_i32_0 : i32, i32
  }
  func.func @transform_5(%arg0: i32) -> (i32, i32) {
    %c0_i32 = arith.constant 0 : i32
    %c0_i32_0 = arith.constant 0 : i32
    return %c0_i32, %arg0 : i32, i32
  }
}

</mosaic_0001>

<bundles_post_ra>
// kernel: tpu_custom_call.1
= control target key start
LH: loop header
LB: loop body
LE: loop exit
PB: predicated region body
PF: predicated region fallthrough
CT: control target
= control target key end

     0   :  { %10 = vsyncpa [#allocation4], 0  ;;  %s1709_s0 = inlined_call_operand.vmem [shape: bf16[16,512], index: 0, kind: input, shape index: {}]   ;;  %s1710_s1 = inlined_call_operand.vmem [shape: bf16[256,16], index: 1, kind: input, shape index: {}]   ;;  %s1711_s2 = inlined_call_operand.vmem [shape: f32[256,1], index: 2, kind: input, shape index: {}]   ;;  %s1712_s3 = inlined_call_operand.vmem [shape: f32[8,256], index: 3, kind: input, shape index: {}]   ;;  %s1713_s4 = inlined_call_operand.vmem [shape: f32[8,1], index: 4, kind: input, shape index: {}]   ;;  %s1714_s5 = inlined_call_operand.hbm [shape: f32[8,512], index: 5, kind: output, shape index: {}]  }
   0x1   :  { %12 = vsyncpa [#allocation4 + $0x1], 0  ;;  %s1321_s18 = smov 0   ;;  %s1323_s19 = smov 0  }
   0x2   :  { %s1325_s20 = smov 0   ;;  %s1327_s21 = smov 0  }
   0x3 LB: > { %s1047_s22 = sadd.s32 4294967295, %s1287_s21   ;;  %s1048_s23 = sadd.s32 4294967294, %s1287_s21   ;;  %s1287_s21 = sphi %s1327_s21, %s1720_s21   ;;  %s1283_s20 = sphi %s1325_s20, %s1719_s20   ;;  %s1279_s19 = sphi %s1323_s19, %s1718_s19   ;;  %s1275_s18 = sphi %s1321_s18, %s1717_s18  }
   0x4   : > { %s1344_s24 = sadd.s32 1, %s1287_s21   ;;  %s25_s25 = sadd.s32 1, %s1283_s20 }
   0x5   : > { %s22_s26 = ssub.s32 %s1287_s21, %s1344_s24  ;;  %p32_p0 = scmp.ne.s32.totalorder %s1283_s20, %s1279_s19 }
   0x6   : > { %p23_p1 = scmp.eq.s32.totalorder %s22_s26, 0  ;;  %p33_p2 = scmp.eq.s32.totalorder %s1287_s21, 0 }
   0x7   : > { %p146_p3 = scmp.eq.s32.totalorder %s1047_s22, 1  ;;  %p151_p4 = scmp.ne.s32.totalorder %s1279_s19, %s1275_s18 }
   0x8   : > { %s1357_s27 = scalar_select %p23_p1, %s1283_s20, %s25_s25  }
   0x9   : > { %p34_p5 = por %p33_p2, %p32_p0  ;;  %p1359_p6 = por %p146_p3, %p32_p0 }
   0xa   : > { %p152_p7 = scmp.eq.s32.totalorder %s1048_s23, 1  ;;  %p1050_p9 = scmp.ge.s32.totalorder %s1287_s21, 2 }
   0xc   : > { %p1363_p8 = por %p152_p7, %p151_p4  ;;  %180 = sbr.rel (%p1050_p9) target bundleno = 26 (0x1a), region = 32 }
  0x13   : > { %183 = sbr.rel (!%p34_p5) target bundleno = 26 (0x1a), region = 36  ;;  %s185_s30 = sand.u32 (%p34_p5), 1, %s1283_s20  }
  0x14   : > { %s1096_s6 = sshll.u32 (%p34_p5), %s1287_s21, 3  ;;  %s1051_s7 = sshll.u32 (%p34_p5), %s185_s30, 4 }
  0x15   : > { %s190_s10 = scalar_lea.vmem (%p34_p5), %s1709_s0, %s1096_s6  ;;  %s187_s11 = scalar_lea.vmem (%p34_p5), [#allocation2], %s1051_s7 }
  0x16   : > { %v220_v0 = vld [vmem:[%s190_s10] sm:$0xff] (%p34_p5)  ;;  %v222_v1 = vld [vmem:[%s190_s10 + $0x10] sm:$0xff] (%p34_p5) }
  0x17   : > { %221 = vst [vmem:[%s187_s11] sm:$0xff] (%p34_p5), %v220_v0  ;;  %223 = vst [vmem:[%s187_s11 + $0x8] sm:$0xff] (%p34_p5), %v222_v1 }
  0x1a PF: > { %p1054_p10 = scmp.ge.s32.totalorder %s1287_s21, 1  ;;  %p228_p11 = scmp.lt.s32.totalorder %s1287_s21, 3 }
  0x1c   : > { %p229_p12 = pnand %p1054_p10, %p228_p11 }
  0x1d   : > { %s235_s12 = sand.u32 (!%p229_p12), 1, %s1279_s19   ;;  %v1289_v2 = vmov (!%p229_p12), 0   ;;  %v1209_v4 = vld [vmem:[%s1710_s1] sm:$0xff] (!%p229_p12)   ;;  %vm581_vm0 = vcmask (!%p229_p12), 130048   ;;  %v1211_v7 = vld [vmem:[%s1710_s1 + $0x8] sm:$0xff] (!%p229_p12)   ;;  %v301_v11 = vld [vmem:[%s1711_s2 + $0x10] sm:$0xff] (!%p229_p12) }
  0x1e   : > { %232 = sbr.rel (%p229_p12) target bundleno = 579 (0x243), region = 74  ;;  %s1380_s13 = sshll.u32 (!%p229_p12), %s235_s12, 4  ;;  %662 = vmatprep.mubr.bf16.mxu0 (!%p229_p12), %v1289_v2  ;;  %742 = vmatprep.mubr.bf16.mxu1 (!%p229_p12), %v1289_v2  ;;  %v1210_v6 = vld [vmem:[%s1710_s1 + $0x40] sm:$0xff] (!%p229_p12)   ;;  %v1212_v8 = vld [vmem:[%s1710_s1 + $0x48] sm:$0xff] (!%p229_p12)   ;;  %v302_v13 = vld [vmem:[%s1711_s2 + $0x18] sm:$0xff] (!%p229_p12) }
  0x1f   : > { %1204 = vset.pattern.permute.xlu0 (!%p229_p12), %v1289_v2  ;;  %1205 = vset.pattern.permute.xlu1 (!%p229_p12), %v1289_v2  ;;  %s237_s14 = scalar_lea.vmem (!%p229_p12), [#allocation2], %s1380_s13  ;;  %v299_v9 = vld [vmem:[%s1711_s2] sm:$0xff] (!%p229_p12)  ;;  %v300_v10 = vld [vmem:[%s1711_s2 + $0x8] sm:$0xff] (!%p229_p12)  ;;  %v1213_v14 = vld [vmem:[%s1710_s1 + $0x10] sm:$0xff] (!%p229_p12)   ;;  %s1097_s25 = sshll.u32 (!%p229_p12), %s1047_s22, 8 }
  0x20   : > { %v1206_v3 = vld [vmem:[%s237_s14 + $0x4] ss:$8 sps:$4 sm:$0xff] (!%p229_p12)   ;;  %v1208_v5 = vld [vmem:[%s237_s14] ss:$8 sps:$4 sm:$0xff] (!%p229_p12)   ;;  %333 = vperm.xlu0 (!%p229_p12), %1204, %v299_v9   ;;  %343 = vperm.xlu1 (!%p229_p12), %1205, %v301_v11   ;;  %s261_s26 = scalar_lea.vmem (!%p229_p12), [#allocation3], %s1380_s13  ;;  %s1664_s8 = scalar_lea.hbm (!%p229_p12), %s1714_s5, %s1097_s25 }
  0x21   : > { %630 = vmatprep.subr.bf16.mxu0 (!%p229_p12), %v1206_v3  ;;  %1162 = vmatprep.subr.bf16.mxu1 (!%p229_p12), %v1206_v3  ;;  %v303_v12 = vld [vmem:[%s1711_s2 + $0x20] sm:$0xff] (!%p229_p12)  ;;  %v1214_v15 = vld [vmem:[%s1710_s1 + $0x50] sm:$0xff] (!%p229_p12)   ;;  %v304_v17 = vld [vmem:[%s1711_s2 + $0x28] sm:$0xff] (!%p229_p12)  ;;  %s983_s30 = sshll.u32 (!%p229_p12), %s261_s26, 4  ;;  %s969_s22 = scalar_lea.sflag (!%p229_p12), [#allocation4], %s235_s12  ;;  %s1666_s30 = int_to_ptr.vmem [resolvable:$true] %s983_s30 }
  0x22   : > { %631 = vmatpush1.bf16.msra.mxu0 (!%p229_p12), %v1208_v5  ;;  %1163 = vmatpush1.bf16.msra.mxu1 (!%p229_p12), %v1208_v5  ;;  %v305_v16 = vld [vmem:[%s1711_s2 + $0x30] sm:$0xff] (!%p229_p12)  ;;  %v307_v18 = vld [vmem:[%s1711_s2 + $0x40] sm:$0xff] (!%p229_p12)  ;;  %v306_v19 = vld [vmem:[%s1711_s2 + $0x38] sm:$0xff] (!%p229_p12)  ;;  %s1225_s13 = scalar_lea.vmem (!%p229_p12), %s1666_s30, 256  ;;  %s1290_s9 = smov (!%p229_p12), [#allocation3]  }
  0x23   : > { %v1215_v20 = vld [vmem:[%s1710_s1 + $0x18] sm:$0xff] (!%p229_p12)   ;;  %v309_v22 = vld [vmem:[%s1711_s2 + $0x50] sm:$0xff] (!%p229_p12)  ;;  %v308_v23 = vld [vmem:[%s1711_s2 + $0x48] sm:$0xff] (!%p229_p12)  ;;  %p1226_p13 = scmp.ne.s32.totalorder (!%p229_p12), %s1666_s30, %s1225_s13  ;;  %s1229_s10 = sshll.u32 (!%p229_p12), %s1290_s9, 4  ;;  %s1230_s10 = int_to_ptr.vmem [resolvable:$false] %s1229_s10 }
  0x24   : > { %338 = vperm.xlu0 (!%p229_p12), %1204, %v300_v10   ;;  %348 = vperm.xlu1 (!%p229_p12), %1205, %v302_v13   ;;  %v1216_v21 = vld [vmem:[%s1710_s1 + $0x58] sm:$0xff] (!%p229_p12)   ;;  %v311_v24 = vld [vmem:[%s1711_s2 + $0x60] sm:$0xff] (!%p229_p12)  ;;  %v313_v28 = vld [vmem:[%s1711_s2 + $0x70] sm:$0xff] (!%p229_p12)  ;;  %s1231_s11 = scalar_lea.vmem (!%p229_p12), %s1230_s10, 512  ;;  %p1232_p2 = scmp.lt.s32.totalorder (!%p229_p12), %s1666_s30, %s1230_s10 }
  0x25   : > { %1075 = vmatmul.mubr.msk.bf16.vlgmr.msra.gmra.mrb[0].mxu0 %vm581_vm0, %v1209_v4  ;;  %1083 = vmatmul.mubr.msk.bf16.vlgmr.msra.gmra.mrb[0].mxu1 %vm581_vm0, %v1210_v6  ;;  %v310_v25 = vld [vmem:[%s1711_s2 + $0x58] sm:$0xff]  ;;  %v1217_v26 = vld [vmem:[%s1710_s1 + $0x20] sm:$0xff]   ;;  %v312_v29 = vld [vmem:[%s1711_s2 + $0x68] sm:$0xff]  ;;  %p1227_p0 = pnand %p1226_p13, %p1359_p6  ;;  %p1233_p3 = scmp.lt.s32.totalorder %s1231_s11, %s1225_s13 }
  0x26   : > { %672 = vmatprep.mubr.bf16.mxu0 %v1289_v2  ;;  %752 = vmatprep.mubr.bf16.mxu1 %v1289_v2  ;;  %v1218_v27 = vld [vmem:[%s1710_s1 + $0x60] sm:$0xff]   ;;  %v314_v31 = vld [vmem:[%s1711_s2 + $0x78] sm:$0xff]  ;;  %v1219_v32 = vld [vmem:[%s1710_s1 + $0x28] sm:$0xff]  }
  0x27   : > { %v315_v30 = vld [vmem:[%s1711_s2 + $0x80] sm:$0xff]  ;;  %v1220_v33 = vld [vmem:[%s1710_s1 + $0x68] sm:$0xff]   ;;  %v317_v34 = vld [vmem:[%s1711_s2 + $0x90] sm:$0xff]  ;;  %p1228_p1 = pneg %p1227_p0  ;;  %p1234_p4 = por %p1233_p3, %p1232_p2 }
  0x28   : > { %353 = vperm.xlu0 %1204, %v303_v12   ;;  %358 = vperm.xlu1 %1205, %v304_v17   ;;  %v316_v35 = vld [vmem:[%s1711_s2 + $0x88] sm:$0xff]  ;;  %v319_v36 = vld [vmem:[%s1711_s2 + $0xa0] sm:$0xff]  ;;  %v318_v37 = vld [vmem:[%s1711_s2 + $0x98] sm:$0xff] }
  0x29   : > { %v1221_v38 = vld [vmem:[%s1710_s1 + $0x30] sm:$0xff]   ;;  %v320_v41 = vld [vmem:[%s1711_s2 + $0xa8] sm:$0xff]  ;;  %v323_v42 = vld [vmem:[%s1711_s2 + $0xc0] sm:$0xff]  ;;  %p1235_p5 = pnand %p1234_p4, %p1228_p1 }
  0x2a   : > { %v1222_v39 = vld [vmem:[%s1710_s1 + $0x70] sm:$0xff]   ;;  %v322_v43 = vld [vmem:[%s1711_s2 + $0xb8] sm:$0xff]  ;;  %v324_v47 = vld [vmem:[%s1711_s2 + $0xc8] sm:$0xff] }
  0x2b   : > { %v321_v40 = vld [vmem:[%s1711_s2 + $0xb0] sm:$0xff]  ;;  %v1223_v44 = vld [vmem:[%s1710_s1 + $0x38] sm:$0xff]   ;;  %v327_v48 = vld [vmem:[%s1711_s2 + $0xe0] sm:$0xff] }
  0x2c   : > { %363 = vperm.xlu0 %1204, %v305_v16   ;;  %368 = vperm.xlu1 %1205, %v306_v19   ;;  %v1224_v45 = vld [vmem:[%s1710_s1 + $0x78] sm:$0xff]   ;;  %v325_v46 = vld [vmem:[%s1711_s2 + $0xd0] sm:$0xff]  ;;  %v328_v51 = vld [vmem:[%s1711_s2 + $0xe8] sm:$0xff] }
  0x2d   : > { %1076 = vmatmul.mubr.msk.bf16.gmra.mrb[4].mxu0 %vm581_vm0, %v1211_v7  ;;  %1084 = vmatmul.mubr.msk.bf16.gmra.mrb[4].mxu1 %vm581_vm0, %v1212_v8  ;;  %v326_v49 = vld [vmem:[%s1711_s2 + $0xd8] sm:$0xff]  ;;  %v329_v50 = vld [vmem:[%s1711_s2 + $0xf0] sm:$0xff]  ;;  %v889_v52 = vld [vmem:[%s1713_s4] sm:$0xff] }
  0x2e   : > { %682 = vmatprep.mubr.bf16.mxu0 %v1289_v2  ;;  %762 = vmatprep.mubr.bf16.mxu1 %v1289_v2  ;;  %v330_v53 = vld [vmem:[%s1711_s2 + $0xf8] sm:$0xff]  ;;  %v888_v62 = vld [vmem:[%s1712_s3 + $0x8] sm:$0xff] }
  0x30   : > { %373 = vperm.xlu0 %1204, %v307_v18   ;;  %378 = vperm.xlu1 %1205, %v308_v23  }
  0x34   : > { %383 = vperm.xlu0 %1204, %v309_v22   ;;  %388 = vperm.xlu1 %1205, %v310_v25  }
  0x35   : > { %1077 = vmatmul.mubr.msk.bf16.gmra.mrb[8].mxu0 %vm581_vm0, %v1213_v14  ;;  %1085 = vmatmul.mubr.msk.bf16.gmra.mrb[8].mxu1 %vm581_vm0, %v1214_v15 }
  0x36   : > { %692 = vmatprep.mubr.bf16.mxu0 %v1289_v2  ;;  %772 = vmatprep.mubr.bf16.mxu1 %v1289_v2 }
  0x38   : > { %393 = vperm.xlu0 %1204, %v311_v24   ;;  %398 = vperm.xlu1 %1205, %v312_v29  }
  0x3c   : > { %403 = vperm.xlu0 %1204, %v313_v28   ;;  %408 = vperm.xlu1 %1205, %v314_v31  }
  0x3d   : > { %1078 = vmatmul.mubr.msk.bf16.gmra.mrb[12].mxu0 %vm581_vm0, %v1215_v20  ;;  %1086 = vmatmul.mubr.msk.bf16.gmra.mrb[12].mxu1 %vm581_vm0, %v1216_v21 }
  0x3e   : > { %702 = vmatprep.mubr.bf16.mxu0 %v1289_v2  ;;  %782 = vmatprep.mubr.bf16.mxu1 %v1289_v2 }
  0x40   : > { %413 = vperm.xlu0 %1204, %v315_v30   ;;  %418 = vperm.xlu1 %1205, %v316_v35  }
  0x44   : > { %423 = vperm.xlu0 %1204, %v317_v34   ;;  %428 = vperm.xlu1 %1205, %v318_v37  }
  0x45   : > { %1079 = vmatmul.mubr.msk.bf16.gmra.mrb[16].mxu0 %vm581_vm0, %v1217_v26  ;;  %1087 = vmatmul.mubr.msk.bf16.gmra.mrb[16].mxu1 %vm581_vm0, %v1218_v27 }
  0x46   : > { %712 = vmatprep.mubr.bf16.mxu0 %v1289_v2  ;;  %792 = vmatprep.mubr.bf16.mxu1 %v1289_v2 }
  0x48   : > { %433 = vperm.xlu0 %1204, %v319_v36   ;;  %438 = vperm.xlu1 %1205, %v320_v41  }
  0x4c   : > { %443 = vperm.xlu0 %1204, %v321_v40   ;;  %448 = vperm.xlu1 %1205, %v322_v43  }
  0x4d   : > { %1080 = vmatmul.mubr.msk.bf16.gmra.mrb[20].mxu0 %vm581_vm0, %v1219_v32  ;;  %1088 = vmatmul.mubr.msk.bf16.gmra.mrb[20].mxu1 %vm581_vm0, %v1220_v33 }
  0x4e   : > { %722 = vmatprep.mubr.bf16.mxu0 %v1289_v2  ;;  %802 = vmatprep.mubr.bf16.mxu1 %v1289_v2 }
  0x50   : > { %453 = vperm.xlu0 %1204, %v323_v42   ;;  %458 = vperm.xlu1 %1205, %v324_v47  }
  0x54   : > { %463 = vperm.xlu0 %1204, %v325_v46   ;;  %468 = vperm.xlu1 %1205, %v326_v49  }
  0x55   : > { %1081 = vmatmul.mubr.msk.bf16.gmra.mrb[24].mxu0 %vm581_vm0, %v1221_v38  ;;  %1089 = vmatmul.mubr.msk.bf16.gmra.mrb[24].mxu1 %vm581_vm0, %v1222_v39 }
  0x56   : > { %732 = vmatprep.mubr.bf16.mxu0 %v1289_v2  ;;  %812 = vmatprep.mubr.bf16.mxu1 %v1289_v2 }
  0x58   : > { %473 = vperm.xlu0 %1204, %v327_v48   ;;  %478 = vperm.xlu1 %1205, %v328_v51  }
  0x5c   : > { %483 = vperm.xlu0 %1204, %v329_v50   ;;  %488 = vperm.xlu1 %1205, %v330_v53  }
  0x5d   : > { %1082 = vmatmul.mubr.msk.bf16.gmra.mrb[28].mxu0 %vm581_vm0, %v1223_v44  ;;  %1090 = vmatmul.mubr.msk.bf16.gmra.mrb[28].mxu1 %vm581_vm0, %v1224_v45 }
  0x5e   : > { %959 = vmatprep.mubr.f32.mxu1 %v888_v62 }
  0x60   : > { %892 = vperm.xlu0 %1204, %v889_v52  }
  0x9f   : > { %v334_v54 = vpop.permute.xlu0 %333  ;;  %v344_v55 = vpop.permute.xlu1 %343 }
  0xa3   : > { %v339_v56 = vpop.permute.xlu0 %338  ;;  %v1564_v57 = vpop.permute.xlu1 %348 }
  0xa7   : > { %v1566_v58 = vpop.permute.xlu0 %353  ;;  %v1568_v59 = vpop.permute.xlu1 %358 }
  0xab   : > { %v1570_v60 = vpop.permute.xlu0 %363  ;;  %v1572_v61 = vpop.permute.xlu1 %368 }
  0xaf   : > { %v1577_v63 = vpop.permute.xlu0 %373  ;;  %v1579_v0 = vpop.permute.xlu1 %378 }
  0xb3   : > { %v1581_v1 = vpop.permute.xlu0 %383  ;;  %v1583_v2 = vpop.permute.xlu1 %388 }
  0xb7   : > { %v1585_v3 = vpop.permute.xlu0 %393  ;;  %v1587_v4 = vpop.permute.xlu1 %398 }
  0xbb   : > { %v1589_v5 = vpop.permute.xlu0 %403  ;;  %v1591_v6 = vpop.permute.xlu1 %408 }
  0xbf   : > { %v414_v7 = vpop.permute.xlu0 %413  ;;  %v419_v8 = vpop.permute.xlu1 %418 }
  0xc3   : > { %v424_v33 = vpop.permute.xlu0 %423  ;;  %v429_v35 = vpop.permute.xlu1 %428 }
  0xf8   : > { %v664_v9 = vpop.f32.mrb[0].mxu0  ;;  %v744_v10 = vpop.f32.mrb[0].mxu1 }
  0xf9   : > { %v665_v11 = vadd.f32 %v664_v9, %v334_v54  ;;  %v666_v12 = vpop.f32.mrb[1].mxu0  ;;  %v745_v13 = vadd.f32 %v744_v10, %v414_v7  ;;  %v746_v14 = vpop.f32.mrb[1].mxu1 }
  0xfa   : > { %v667_v15 = vadd.f32 %v666_v12, %v334_v54  ;;  %v668_v16 = vpop.f32.mrb[2].mxu0  ;;  %v747_v17 = vadd.f32 %v746_v14, %v414_v7  ;;  %v748_v18 = vpop.f32.mrb[2].mxu1 }
  0xfb   : > { %v669_v19 = vadd.f32 %v668_v16, %v339_v56  ;;  %v670_v20 = vpop.f32.mrb[3].mxu0  ;;  %v855_v21 = vmax.f32 %v745_v13, 0.0  ;;  %v749_v22 = vadd.f32 %v748_v18, %v419_v8  ;;  %v750_v23 = vpop.f32.mrb[3].mxu1  ;;  %v823_v27 = vmax.f32 %v665_v11, 0.0 }
  0xfc   : > { %v671_v24 = vadd.f32 %v670_v20, %v339_v56  ;;  %v856_v25 = vmax.f32 %v747_v17, 0.0  ;;  %v751_v26 = vadd.f32 %v750_v23, %v419_v8  ;;  %v824_v30 = vmax.f32 %v667_v15, 0.0  ;;  %v434_v12 = vpop.permute.xlu0 %433  ;;  %v439_v14 = vpop.permute.xlu1 %438 }
  0xfd   : > { %v825_v28 = vmax.f32 %v669_v19, 0.0  ;;  %v857_v29 = vmax.f32 %v749_v22, 0.0 }
  0xfe   : > { %v826_v31 = vmax.f32 %v671_v24, 0.0  ;;  %v858_v32 = vmax.f32 %v751_v26, 0.0 }
  0xff   : > { %v1100_v34 = vpack.c.bf16 %v825_v28, %v823_v27  ;;  %v1593_v36 = vpack.c.bf16 %v857_v29, %v855_v21 }
 0x100   : > { %v1098_v37 = vpack.c.bf16 %v826_v31, %v824_v30  ;;  %v674_v38 = vpop.f32.mrb[4].mxu0  ;;  %v1595_v39 = vpack.c.bf16 %v858_v32, %v856_v25  ;;  %v754_v40 = vpop.f32.mrb[4].mxu1 }
 0x101   : > { %v675_v41 = vadd.f32 %v674_v38, %v344_v55  ;;  %v676_v42 = vpop.f32.mrb[5].mxu0  ;;  %v755_v43 = vadd.f32 %v754_v40, %v424_v33  ;;  %v756_v44 = vpop.f32.mrb[5].mxu1 }
 0x102   : > { %v677_v45 = vadd.f32 %v676_v42, %v344_v55  ;;  %v678_v46 = vpop.f32.mrb[6].mxu0  ;;  %1099 = vmatprep.subr.bf16.mxu1 %v1098_v37  ;;  %v757_v47 = vadd.f32 %v756_v44, %v424_v33  ;;  %v758_v48 = vpop.f32.mrb[6].mxu1 }
 0x103   : > { %v679_v49 = vadd.f32 %v678_v46, %v1564_v57  ;;  %v680_v50 = vpop.f32.mrb[7].mxu0  ;;  %1101 = vmatpush1.bf16.msra.mxu1 %v1100_v34  ;;  %v859_v51 = vmax.f32 %v755_v43, 0.0  ;;  %v759_v52 = vadd.f32 %v758_v48, %v429_v35  ;;  %v760_v53 = vpop.f32.mrb[7].mxu1  ;;  %v827_v7 = vmax.f32 %v675_v41, 0.0 }
 0x104   : > { %v681_v54 = vadd.f32 %v680_v50, %v1564_v57  ;;  %v860_v56 = vmax.f32 %v757_v47, 0.0  ;;  %v761_v62 = vadd.f32 %v760_v53, %v429_v35  ;;  %v828_v10 = vmax.f32 %v677_v45, 0.0  ;;  %v444_v42 = vpop.permute.xlu0 %443  ;;  %v449_v43 = vpop.permute.xlu1 %448 }
 0x105   : > { %v829_v8 = vmax.f32 %v679_v49, 0.0  ;;  %v861_v9 = vmax.f32 %v759_v52, 0.0 }
 0x106   : > { %v830_v55 = vmax.f32 %v681_v54, 0.0  ;;  %v862_v11 = vmax.f32 %v761_v62, 0.0 }
 0x107   : > { %v1104_v13 = vpack.c.bf16 %v829_v8, %v827_v7  ;;  %v1599_v15 = vpack.c.bf16 %v861_v9, %v859_v51 }
 0x108   : > { %v1102_v16 = vpack.c.bf16 %v830_v55, %v828_v10  ;;  %v684_v17 = vpop.f32.mrb[8].mxu0  ;;  %v1601_v18 = vpack.c.bf16 %v862_v11, %v860_v56  ;;  %v764_v19 = vpop.f32.mrb[8].mxu1 }
 0x109   : > { %v685_v57 = vadd.f32 %v684_v17, %v1566_v58  ;;  %v686_v20 = vpop.f32.mrb[9].mxu0  ;;  %v765_v21 = vadd.f32 %v764_v19, %v434_v12  ;;  %v766_v22 = vpop.f32.mrb[9].mxu1 }
 0x10a   : > { %v687_v23 = vadd.f32 %v686_v20, %v1566_v58  ;;  %v688_v24 = vpop.f32.mrb[10].mxu0  ;;  %1103 = vmatprep.subr.bf16.mxu1 %v1102_v16  ;;  %v767_v25 = vadd.f32 %v766_v22, %v434_v12  ;;  %v768_v26 = vpop.f32.mrb[10].mxu1 }
 0x10b   : > { %v689_v27 = vadd.f32 %v688_v24, %v1568_v59  ;;  %v690_v28 = vpop.f32.mrb[11].mxu0  ;;  %1105 = vmatpush1.bf16.msra.mxu1 %v1104_v13  ;;  %v863_v29 = vmax.f32 %v765_v21, 0.0  ;;  %v769_v30 = vadd.f32 %v768_v26, %v439_v14  ;;  %v770_v31 = vpop.f32.mrb[11].mxu1  ;;  %v831_v35 = vmax.f32 %v685_v57, 0.0 }
 0x10c   : > { %v691_v32 = vadd.f32 %v690_v28, %v1568_v59  ;;  %v864_v33 = vmax.f32 %v767_v25, 0.0  ;;  %v771_v34 = vadd.f32 %v770_v31, %v439_v14  ;;  %v832_v40 = vmax.f32 %v687_v23, 0.0  ;;  %v454_v20 = vpop.permute.xlu0 %453  ;;  %v459_v21 = vpop.permute.xlu1 %458 }
 0x10d   : > { %v833_v37 = vmax.f32 %v689_v27, 0.0  ;;  %v865_v38 = vmax.f32 %v769_v30, 0.0 }
 0x10e   : > { %v834_v58 = vmax.f32 %v691_v32, 0.0  ;;  %v866_v41 = vmax.f32 %v771_v34, 0.0 }
 0x10f   : > { %v1108_v44 = vpack.c.bf16 %v833_v37, %v831_v35  ;;  %v1607_v45 = vpack.c.bf16 %v865_v38, %v863_v29 }
 0x110   : > { %v1106_v46 = vpack.c.bf16 %v834_v58, %v832_v40  ;;  %v1609_v47 = vpack.c.bf16 %v866_v41, %v864_v33  ;;  %v694_v48 = vpop.f32.mrb[12].mxu0  ;;  %v774_v49 = vpop.f32.mrb[12].mxu1 }
 0x111   : > { %v695_v59 = vadd.f32 %v694_v48, %v1570_v60  ;;  %v775_v50 = vadd.f32 %v774_v49, %v444_v42  ;;  %v696_v51 = vpop.f32.mrb[13].mxu0  ;;  %v776_v52 = vpop.f32.mrb[13].mxu1 }
 0x112   : > { %v697_v53 = vadd.f32 %v696_v51, %v1570_v60  ;;  %v777_v54 = vadd.f32 %v776_v52, %v444_v42  ;;  %v698_v56 = vpop.f32.mrb[14].mxu0  ;;  %v778_v62 = vpop.f32.mrb[14].mxu1  ;;  %1107 = vmatprep.subr.bf16.mxu1 %v1106_v46 }
 0x113   : > { %v867_v7 = vmax.f32 %v775_v50, 0.0  ;;  %v699_v8 = vadd.f32 %v698_v56, %v1572_v61  ;;  %v779_v9 = vadd.f32 %v778_v62, %v449_v43  ;;  %v700_v10 = vpop.f32.mrb[15].mxu0  ;;  %v780_v55 = vpop.f32.mrb[15].mxu1  ;;  %1109 = vmatpush1.bf16.msra.mxu1 %v1108_v44  ;;  %v835_v14 = vmax.f32 %v695_v59, 0.0 }
 0x114   : > { %v868_v11 = vmax.f32 %v777_v54, 0.0  ;;  %v701_v12 = vadd.f32 %v700_v10, %v1572_v61  ;;  %v781_v13 = vadd.f32 %v780_v55, %v449_v43  ;;  %v836_v19 = vmax.f32 %v697_v53, 0.0  ;;  %v464_v50 = vpop.permute.xlu0 %463  ;;  %v469_v51 = vpop.permute.xlu1 %468 }
 0x115   : > { %v837_v16 = vmax.f32 %v699_v8, 0.0  ;;  %v869_v17 = vmax.f32 %v779_v9, 0.0 }
 0x116   : > { %v838_v60 = vmax.f32 %v701_v12, 0.0  ;;  %v870_v57 = vmax.f32 %v781_v13, 0.0 }
 0x117   : > { %v1112_v22 = vpack.c.bf16 %v837_v16, %v835_v14  ;;  %v1615_v23 = vpack.c.bf16 %v869_v17, %v867_v7 }
 0x118   : > { %v1110_v24 = vpack.c.bf16 %v838_v60, %v836_v19  ;;  %v1617_v25 = vpack.c.bf16 %v870_v57, %v868_v11  ;;  %v704_v26 = vpop.f32.mrb[16].mxu0  ;;  %v784_v27 = vpop.f32.mrb[16].mxu1 }
 0x119   : > { %v705_v28 = vadd.f32 %v704_v26, %v1577_v63  ;;  %v785_v61 = vadd.f32 %v784_v27, %v454_v20  ;;  %v706_v29 = vpop.f32.mrb[17].mxu0  ;;  %v786_v30 = vpop.f32.mrb[17].mxu1 }
 0x11a   : > { %v707_v31 = vadd.f32 %v706_v29, %v1577_v63  ;;  %v787_v32 = vadd.f32 %v786_v30, %v454_v20  ;;  %v708_v33 = vpop.f32.mrb[18].mxu0  ;;  %v788_v34 = vpop.f32.mrb[18].mxu1  ;;  %1111 = vmatprep.subr.bf16.mxu1 %v1110_v24 }
 0x11b   : > { %v709_v35 = vadd.f32 %v708_v33, %v1579_v0  ;;  %v789_v37 = vadd.f32 %v788_v34, %v459_v21  ;;  %v710_v38 = vpop.f32.mrb[19].mxu0  ;;  %v790_v40 = vpop.f32.mrb[19].mxu1  ;;  %1113 = vmatpush1.bf16.msra.mxu1 %v1112_v22  ;;  %v839_v42 = vmax.f32 %v705_v28, 0.0  ;;  %v871_v43 = vmax.f32 %v785_v61, 0.0 }
 0x11c   : > { %v711_v58 = vadd.f32 %v710_v38, %v1579_v0  ;;  %v791_v41 = vadd.f32 %v790_v40, %v459_v21  ;;  %v840_v48 = vmax.f32 %v707_v31, 0.0  ;;  %v872_v49 = vmax.f32 %v787_v32, 0.0  ;;  %v474_v61 = vpop.permute.xlu0 %473  ;;  %v479_v29 = vpop.permute.xlu1 %478 }
 0x11d   : > { %v841_v44 = vmax.f32 %v709_v35, 0.0  ;;  %v873_v46 = vmax.f32 %v789_v37, 0.0 }
 0x11e   : > { %v842_v63 = vmax.f32 %v711_v58, 0.0  ;;  %v874_v59 = vmax.f32 %v791_v41, 0.0 }
 0x11f   : > { %v1116_v52 = vpack.c.bf16 %v841_v44, %v839_v42  ;;  %v1623_v53 = vpack.c.bf16 %v873_v46, %v871_v43 }
 0x120   : > { %v1114_v54 = vpack.c.bf16 %v842_v63, %v840_v48  ;;  %v1625_v56 = vpack.c.bf16 %v874_v59, %v872_v49  ;;  %v714_v62 = vpop.f32.mrb[20].mxu0  ;;  %v794_v7 = vpop.f32.mrb[20].mxu1 }
 0x121   : > { %v715_v0 = vadd.f32 %v714_v62, %v1581_v1  ;;  %v795_v8 = vadd.f32 %v794_v7, %v464_v50  ;;  %v716_v9 = vpop.f32.mrb[21].mxu0  ;;  %v796_v10 = vpop.f32.mrb[21].mxu1 }
 0x122   : > { %v717_v55 = vadd.f32 %v716_v9, %v1581_v1  ;;  %v797_v11 = vadd.f32 %v796_v10, %v464_v50  ;;  %v718_v12 = vpop.f32.mrb[22].mxu0  ;;  %v798_v13 = vpop.f32.mrb[22].mxu1  ;;  %1115 = vmatprep.subr.bf16.mxu1 %v1114_v54 }
 0x123   : > { %v719_v14 = vadd.f32 %v718_v12, %v1583_v2  ;;  %v799_v16 = vadd.f32 %v798_v13, %v469_v51  ;;  %v720_v17 = vpop.f32.mrb[23].mxu0  ;;  %v800_v19 = vpop.f32.mrb[23].mxu1  ;;  %1117 = vmatpush1.bf16.msra.mxu1 %v1116_v52  ;;  %v843_v20 = vmax.f32 %v715_v0, 0.0  ;;  %v875_v21 = vmax.f32 %v795_v8, 0.0 }
 0x124   : > { %v721_v60 = vadd.f32 %v720_v17, %v1583_v2  ;;  %v801_v57 = vadd.f32 %v800_v19, %v469_v51  ;;  %v844_v26 = vmax.f32 %v717_v55, 0.0  ;;  %v876_v27 = vmax.f32 %v797_v11, 0.0  ;;  %v484_v8 = vpop.permute.xlu0 %483  ;;  %v489_v9 = vpop.permute.xlu1 %488 }
 0x125   : > { %v845_v22 = vmax.f32 %v719_v14, 0.0  ;;  %v877_v24 = vmax.f32 %v799_v16, 0.0 }
 0x126   : > { %v846_v1 = vmax.f32 %v721_v60, 0.0  ;;  %v878_v28 = vmax.f32 %v801_v57, 0.0 }
 0x127   : > { %v1120_v30 = vpack.c.bf16 %v845_v22, %v843_v20  ;;  %v1631_v31 = vpack.c.bf16 %v877_v24, %v875_v21 }
 0x128   : > { %v1118_v32 = vpack.c.bf16 %v846_v1, %v844_v26  ;;  %v1633_v33 = vpack.c.bf16 %v878_v28, %v876_v27  ;;  %v724_v34 = vpop.f32.mrb[24].mxu0  ;;  %v804_v35 = vpop.f32.mrb[24].mxu1 }
 0x129   : > { %v725_v2 = vadd.f32 %v724_v34, %v1585_v3  ;;  %v805_v37 = vadd.f32 %v804_v35, %v474_v61  ;;  %v726_v38 = vpop.f32.mrb[25].mxu0  ;;  %v806_v40 = vpop.f32.mrb[25].mxu1 }
 0x12a   : > { %v727_v58 = vadd.f32 %v726_v38, %v1585_v3  ;;  %v807_v41 = vadd.f32 %v806_v40, %v474_v61  ;;  %v728_v42 = vpop.f32.mrb[26].mxu0  ;;  %v808_v43 = vpop.f32.mrb[26].mxu1  ;;  %1119 = vmatprep.subr.bf16.mxu1 %v1118_v32 }
 0x12b   : > { %v729_v44 = vadd.f32 %v728_v42, %v1587_v4  ;;  %v809_v46 = vadd.f32 %v808_v43, %v479_v29  ;;  %v730_v48 = vpop.f32.mrb[27].mxu0  ;;  %v810_v49 = vpop.f32.mrb[27].mxu1  ;;  %1121 = vmatpush1.bf16.msra.mxu1 %v1120_v30  ;;  %v847_v50 = vmax.f32 %v725_v2, 0.0  ;;  %v879_v51 = vmax.f32 %v805_v37, 0.0 }
 0x12c   : > { %v731_v63 = vadd.f32 %v730_v48, %v1587_v4  ;;  %v811_v59 = vadd.f32 %v810_v49, %v479_v29  ;;  %v848_v62 = vmax.f32 %v727_v58, 0.0  ;;  %v880_v7 = vmax.f32 %v807_v41, 0.0 }
 0x12d   : > { %v849_v52 = vmax.f32 %v729_v44, 0.0  ;;  %v881_v54 = vmax.f32 %v809_v46, 0.0 }
 0x12e   : > { %v850_v3 = vmax.f32 %v731_v63, 0.0  ;;  %v882_v0 = vmax.f32 %v811_v59, 0.0 }
 0x12f   : > { %v1124_v10 = vpack.c.bf16 %v849_v52, %v847_v50  ;;  %v1156_v55 = vpack.c.bf16 %v881_v54, %v879_v51 }
 0x130   : > { %v1122_v11 = vpack.c.bf16 %v850_v3, %v848_v62  ;;  %v1154_v12 = vpack.c.bf16 %v882_v0, %v880_v7  ;;  %v734_v13 = vpop.f32.mrb[28].mxu0  ;;  %v814_v14 = vpop.f32.mrb[28].mxu1 }
 0x131   : > { %v735_v16 = vadd.f32 %v734_v13, %v1589_v5  ;;  %v815_v4 = vadd.f32 %v814_v14, %v484_v8  ;;  %v736_v17 = vpop.f32.mrb[29].mxu0  ;;  %v816_v19 = vpop.f32.mrb[29].mxu1 }
 0x132   : > { %v737_v60 = vadd.f32 %v736_v17, %v1589_v5  ;;  %v817_v57 = vadd.f32 %v816_v19, %v484_v8  ;;  %v738_v20 = vpop.f32.mrb[30].mxu0  ;;  %v818_v21 = vpop.f32.mrb[30].mxu1  ;;  %1123 = vmatprep.subr.bf16.mxu1 %v1122_v11 }
 0x133   : > { %v739_v22 = vadd.f32 %v738_v20, %v1591_v6  ;;  %v819_v24 = vadd.f32 %v818_v21, %v489_v9  ;;  %v740_v26 = vpop.f32.mrb[31].mxu0  ;;  %v820_v27 = vpop.f32.mrb[31].mxu1  ;;  %1125 = vmatpush1.bf16.msra.mxu1 %v1124_v10  ;;  %v851_v61 = vmax.f32 %v735_v16, 0.0  ;;  %v883_v29 = vmax.f32 %v815_v4, 0.0 }
 0x134   : > { %v741_v1 = vadd.f32 %v740_v26, %v1591_v6  ;;  %v821_v28 = vadd.f32 %v820_v27, %v489_v9  ;;  %v852_v34 = vmax.f32 %v737_v60, 0.0  ;;  %v884_v35 = vmax.f32 %v817_v57, 0.0  ;;  %v887_v6 = vld [vmem:[%s1712_s3] sm:$0xff] }
 0x135   : > { %v853_v30 = vmax.f32 %v739_v22, 0.0  ;;  %v885_v32 = vmax.f32 %v819_v24, 0.0 }
 0x136   : > { %v854_v5 = vmax.f32 %v741_v1, 0.0  ;;  %v886_v2 = vmax.f32 %v821_v28, 0.0 }
 0x137   : > { %v1128_v37 = vpack.c.bf16 %v853_v30, %v851_v61  ;;  %v1160_v38 = vpack.c.bf16 %v885_v32, %v883_v29 }
 0x138   : > { %v1126_v40 = vpack.c.bf16 %v854_v5, %v852_v34  ;;  %v1158_v58 = vpack.c.bf16 %v886_v2, %v884_v35 }
 0x13a   : > { %1127 = vmatprep.subr.bf16.mxu1 %v1126_v40 }
 0x13b   : > { %1129 = vmatpush1.bf16.msra.mxu1 %v1128_v37 }
 0x13c   : > { %1131 = vmatprep.subr.bf16.mxu1 %v1595_v39 }
 0x13f   : > { %1133 = vmatpush1.bf16.msra.mxu1 %v1593_v36  ;;  %v893_v36 = vpop.permute.xlu0 %892 }
 0x140   : > { %1135 = vmatprep.subr.bf16.mxu1 %v1601_v18 }
 0x143   : > { %1137 = vmatpush1.bf16.msra.mxu1 %v1599_v15 }
 0x144   : > { %1139 = vmatprep.subr.bf16.mxu1 %v1609_v47 }
 0x147   : > { %1141 = vmatpush1.bf16.msra.mxu1 %v1607_v45 }
 0x148   : > { %1143 = vmatprep.subr.bf16.mxu1 %v1617_v25 }
 0x14b   : > { %1145 = vmatpush1.bf16.msra.mxu1 %v1615_v23 }
 0x14c   : > { %1147 = vmatprep.subr.bf16.mxu1 %v1625_v56 }
 0x14f   : > { %1149 = vmatpush1.bf16.msra.mxu1 %v1623_v53 }
 0x150   : > { %1151 = vmatprep.subr.bf16.mxu1 %v1633_v33 }
 0x153   : > { %1153 = vmatpush1.bf16.msra.mxu1 %v1631_v31 }
 0x154   : > { %1155 = vmatprep.subr.bf16.mxu1 %v1154_v12 }
 0x157   : > { %1157 = vmatpush1.bf16.msra.mxu1 %v1156_v55 }
 0x158   : > { %1159 = vmatprep.subr.bf16.mxu1 %v1158_v58 }
 0x15b   : > { %1161 = vmatpush1.bf16.msra.mxu1 %v1160_v38 }
 0x15e   : > { %960 = vmatmul.mubr.f32.vlgmr.msra.gmra.mrb[32].mxu1 %v887_v6 }
 0x231   : > { %v961_v39 = vpop.f32.mrb[32].mxu1 }
 0x232   : > { %v962_v15 = vadd.f32 %v961_v39, %v893_v36  ;;  %v963_v18 = vpop.f32.mrb[33].mxu1 }
 0x233   : > { %v964_v45 = vadd.f32 %v963_v18, %v893_v36 }
 0x234   : > { %966 = vst [vmem:[%s261_s26] sm:$0xff] %v962_v15 }
 0x235   : > { %967 = vst [vmem:[%s261_s26 + $0x8] sm:$0xff] %v964_v45 }
 0x236   : > { %1238 = shalt.err (!%p1235_p5)
}
 0x237   : > { %s1239_s12 = scalar_lea.hbm %s1664_s8, 256  ;;  %s1243_s16 = scalar_lea.hbm %s1714_s5, 512 }
 0x238   : > { %p1240_p7 = scmp.ne.s32.totalorder %s1664_s8, %s1239_s12  ;;  %p1244_p12 = scmp.lt.u32.totalorder %s1664_s8, %s1714_s5 }
 0x239   : > { %p1245_p13 = scmp.lt.u32.totalorder %s1243_s16, %s1239_s12  ;;  %p1247_p1 = scmp.lt.u32.totalorder %s1239_s12, %s1664_s8 }
 0x23a   : > { %p1241_p10 = pnand %p1240_p7, %p1359_p6 }
 0x23b   : > { %p1246_p0 = por %p1245_p13, %p1244_p12 }
 0x23c   : > { %p1242_p11 = pneg %p1241_p10 }
 0x23d   : > { %p1248_p2 = por %p1247_p1, %p1246_p0 }
 0x23f   : > { %p1249_p3 = pnand %p1248_p2, %p1242_p11 }
 0x241   : > { %1252 = shalt.err (!%p1249_p3)
}
 0x242   : > { %1164 = dma.vmem_to_hbm [thread:$0]  (%p1359_p6), %s1666_s30, 256, %s1664_s8, %s969_s22  }
 0x243 PF: > { %s995_s25 = sand.u32 1, %s1275_s18   ;;  %p1167_p4 = pnand %p1050_p9, %p1363_p8 }
 0x244   : > { %s996_s26 = scalar_lea.sflag [#allocation4], %s995_s25 }
 0x245   : > { %1270 = dma.done.wait (!%p1167_p4), %s996_s26, 256  }
 0x246   : > { %1272 = vsyncadd (!%p1167_p4), %s996_s26, 4294967040  ;;  %p15_p5 = scmp.ge.s32.totalorder %s1344_s24, 4   ;;  %s1717_s18 = smov %s1279_s19 }
 0x247   : > { %s1718_s19 = smov %s1283_s20  ;;  %s1719_s20 = smov %s1357_s27 }
 0x248   : > { %s1720_s21 = smov %s1344_s24  ;;  %17 = sbr.rel (!%p15_p5) target bundleno = 3 (0x3), region = 118 }
 0x24f   :  { %1001 = vsyncpa [#allocation4], 1 }
 0x250   :  { %1003 = vsyncpa [#allocation4 + $0x1], 1 }

</bundles_post_ra>
